<compile_context>
chip_gen: v6e
topology: v6e:2x2x1
jax: 0.10.0
libtpu: 0.0.40
codegen_flags: <defaults>
</compile_context>

<pallas_src>
import functools

import jax
import jax.numpy as jnp
from jax.experimental import pallas as pl
from jax.experimental.pallas import tpu as pltpu

EPS = 1e-5

# VMEM budget: 128 MiB on v5e/v6e, 64 MiB on v7x.  Leave headroom for double
# buffering / compiler scratch; fall back conservatively if the query is unavailable.
try:
    _VMEM_CAP = int(pltpu.get_tpu_info().vmem_capacity_bytes)
except Exception:  # pragma: no cover
    _VMEM_CAP = 64 * 1024 * 1024
_VMEM_LIMIT = int(min(_VMEM_CAP * 3 // 4, 100 * 1024 * 1024))
_STEP_BUDGET = _VMEM_LIMIT // 3


# ---------------------------------------------------------------------------
# In-kernel helpers
# ---------------------------------------------------------------------------
def _lane_roll(x, shift):
    """Circular roll along the lane (last) axis of a 2-D tile.

    Lanes that wrap land exactly on per-sample boundaries and are zeroed by the
    caller's boundary masks.  128-aligned widths use the XLU lane rotate (free
    slot while the MXU works); small/unaligned widths fall back to slice+concat.
    """
    w = x.shape[1]
    shift = shift % w
    if shift == 0:
        return x
    if w % 128 == 0:
        return pltpu.roll(x, shift, axis=1)
    return jnp.concatenate([x[:, w - shift:], x[:, :w - shift]], axis=1)


def _conv3_dot(w_ref, taps):
    """Accumulate the three k=3 tap matmuls into one f32 result (no im2col concat)."""
    acc = None
    for k, t in enumerate(taps):
        wk = w_ref[k]                                    # (Cout, C) resident weights
        d = jnp.dot(wk, t.astype(wk.dtype), preferred_element_type=jnp.float32)
        acc = d if acc is None else acc + d
    return acc


def _taps_stride1(x, m_first, m_last):
    """Taps of a k=3/pad=1/stride=1 conv on (C, BB*Lout) lanes holding BB samples."""
    w = x.shape[1]
    t0 = _lane_roll(x, 1) * m_first                      # x[:, j-1], 0 at sample starts
    t2 = _lane_roll(x, w - 1) * m_last                   # x[:, j+1], 0 at sample ends
    return t0, x, t2


# ---------------------------------------------------------------------------
# Pass 1: conv1 (+ optional 1x1 stride-2 shortcut conv) + BN1 partial stats
# ---------------------------------------------------------------------------
def _pass1_s1_kernel(x_ref, w_ref, mf_ref, ml_ref, h_ref, s_ref, q_ref):
    h = _conv3_dot(w_ref, _taps_stride1(x_ref[...], mf_ref[...], ml_ref[...]))
    h_ref[...] = h.astype(h_ref.dtype)
    s_ref[0] = jnp.sum(h, axis=1, keepdims=True)         # BN1 partial sum (f32)
    q_ref[0] = jnp.sum(h * h, axis=1, keepdims=True)     # BN1 partial sum of squares


def _pass1_s2_kernel(sc_conv, xe_ref, xo_ref, w_ref, mf_ref, *refs):
    if sc_conv:
        wsc_ref, h_ref, s_ref, q_ref, sc_ref = refs
    else:
        h_ref, s_ref, q_ref = refs
    xe = xe_ref[...]                                      # x[:, 2j]   (centre tap)
    xo = xo_ref[...]                                      # x[:, 2j+1] (right tap)
    t0 = _lane_roll(xo, 1) * mf_ref[...]                  # x[:, 2j-1] (left tap)
    h = _conv3_dot(w_ref, (t0, xe, xo))
    h_ref[...] = h.astype(h_ref.dtype)
    s_ref[0] = jnp.sum(h, axis=1, keepdims=True)
    q_ref[0] = jnp.sum(h * h, axis=1, keepdims=True)
    if sc_conv:                                           # 1x1 / stride-2 shortcut conv
        wsc = wsc_ref[...]
        sc_ref[...] = jnp.dot(wsc, xe.astype(wsc.dtype),
                              preferred_element_type=jnp.float32)


# ---------------------------------------------------------------------------
# Pass 2: folded BN1 + ReLU + conv2 + BN2 partial stats
# ---------------------------------------------------------------------------
def _pass2_kernel(h1_ref, w_ref, g_ref, b_ref, mf_ref, ml_ref, h2_ref, s_ref, q_ref):
    a = jnp.maximum(h1_ref[...].astype(jnp.float32) * g_ref[...] + b_ref[...], 0.0)
    h2 = _conv3_dot(w_ref, _taps_stride1(a, mf_ref[...], ml_ref[...]))
    h2_ref[...] = h2.astype(h2_ref.dtype)
    s_ref[0] = jnp.sum(h2, axis=1, keepdims=True)
    q_ref[0] = jnp.sum(h2 * h2, axis=1, keepdims=True)


# ---------------------------------------------------------------------------
# Pass 3: folded BN2 + shortcut add + ReLU
# ---------------------------------------------------------------------------
def _pass3_kernel(with_res, h2_ref, g_ref, b_ref, *refs):
    if with_res:
        res_ref, out_ref = refs
    else:
        (out_ref,) = refs
    h = h2_ref[...].astype(jnp.float32) * g_ref[...] + b_ref[...]
    if with_res:
        h = h + res_ref[...].astype(jnp.float32)
    out_ref[...] = jnp.maximum(h, 0.0)


# ---------------------------------------------------------------------------
# Wrapper helpers
# ---------------------------------------------------------------------------
def _full_spec(shape):
    nd = len(shape)
    return pl.BlockSpec(shape, lambda g, _nd=nd: (0,) * _nd)


def _lane_spec(rows, lanes):
    return pl.BlockSpec((rows, lanes), lambda g: (0, g))


def _stat_spec(c):
    return pl.BlockSpec((1, c, 1), lambda g: (g, 0, 0))


def _fold_bn(s, q, gamma, beta, count):
    """Per-step partial sums -> per-channel (scale, bias): BN becomes one FMA."""
    mean = jnp.sum(s, axis=0)[:, 0] / count
    ex2 = jnp.sum(q, axis=0)[:, 0] / count
    var = ex2 - mean * mean                               # biased variance (training)
    scale = gamma.astype(jnp.float32) * jax.lax.rsqrt(var + EPS)
    bias = beta.astype(jnp.float32) - mean * scale
    return scale[:, None], bias[:, None]


def _pick_bb(n, lout, per_sample_bytes):
    """Samples per grid step: divides n, keeps lane widths 128-aligned (or the full
    batch), fits the VMEM step budget, and prefers >=2 grid steps (v7x 2 TCs)."""
    aligned = [bb for bb in range(1, n + 1)
               if n % bb == 0 and (bb == n or (bb * lout) % 128 == 0)]
    fits = [bb for bb in aligned if bb * per_sample_bytes <= _STEP_BUDGET]
    if fits:
        multi = [bb for bb in fits if n // bb >= 2]
        return max(multi) if multi else max(fits)
    return min(aligned)


# ---------------------------------------------------------------------------
# Forward
# ---------------------------------------------------------------------------
def _conv_block_forward(x_ncl, params, *, shortcut, mxu_dtype=jnp.bfloat16):
    """x_ncl: (N, C_in, L) float32 (PyTorch layout).  Returns (N, C_out, L_out) f32."""
    w1 = params["conv1"]                                  # (Cout, Cin, 3)
    w2 = params["conv2"]                                  # (Cout, Cout, 3)
    cout, cin, _ = w1.shape
    stride = 2 if cout > cin else 1
    n, _, l = x_ncl.shape
    lout = (l - 1) // stride + 1                          # k=3 / pad=1 output length

    assert cout % 8 == 0, "kernel assumes out_filters % 8 == 0 (f32 sublane tile)"
    if shortcut and stride == 1:
        assert cin == cout, "identity shortcut requires in_filters == out_filters"

    inter_dtype = (jnp.bfloat16 if jnp.dtype(mxu_dtype) == jnp.dtype(jnp.bfloat16)
                   else jnp.float32)
    cinp = ((cin + 7) // 8) * 8                           # pad input channels to sublanes
    x = x_ncl.astype(jnp.float32)
    if cinp != cin:
        x = jnp.pad(x, ((0, 0), (0, cinp - cin), (0, 0)))

    # k-major, channel-padded weights in the MXU dtype: w*k[k, co, c] = w*[co, c, k].
    w1k = jnp.pad(jnp.transpose(w1, (2, 0, 1)).astype(jnp.float32),
                  ((0, 0), (0, 0), (0, cinp - cin))).astype(mxu_dtype)
    w2k = jnp.transpose(w2, (2, 0, 1)).astype(mxu_dtype)

    sc_conv = shortcut and stride == 2
    per_sample_bytes = 2 * (cinp * (l + 2) * 4 + 4 * cout * lout * 4)
    bb = _pick_bb(n, lout, per_sample_bytes)
    gsteps = n // bb
    bbw = bb * lout                                       # output lanes per grid step

    # Per-sample boundary masks: zero the lane that rolls in across a sample edge
    # (this IS the conv zero padding).  Built once; VMEM-resident across the grid.
    pos = jnp.arange(bbw, dtype=jnp.int32) % lout
    m_first = (pos != 0).astype(jnp.float32)[None, :]
    m_last = (pos != lout - 1).astype(jnp.float32)[None, :]

    cparams = pltpu.CompilerParams(dimension_semantics=("parallel",),
                                   vmem_limit_bytes=_VMEM_LIMIT)
    stat_shape = jax.ShapeDtypeStruct((gsteps, cout, 1), jnp.float32)
    itm = jnp.dtype(inter_dtype).itemsize
    wtm = jnp.dtype(mxu_dtype).itemsize
    act = n * cout * lout

    # --------- pass 1: conv1 (+ 1x1 stride-2 shortcut conv) + BN1 stats ---------
    xw = None
    if stride == 1:
        # Wide layout: batch folded onto the lane axis -> (C, N*L).
        xw = jnp.transpose(x, (1, 0, 2)).reshape(cinp, n * l)
        kern1 = _pass1_s1_kernel
        in_specs1 = [_lane_spec(cinp, bb * l), _full_spec(w1k.shape),
                     _full_spec((1, bbw)), _full_spec((1, bbw))]
        args1 = [xw, w1k, m_first, m_last]
    else:
        # Stride 2: deinterleave even/odd positions in the wrapper (XLA strided slice)
        # so in-kernel taps are plain shifted lanes; only kept positions are computed.
        xe = x[:, :, 0::2]
        xo = x[:, :, 1::2]
        if xo.shape[2] != lout:                           # odd L: right tap of last pos is 0
            xo = jnp.pad(xo, ((0, 0), (0, 0), (0, lout - xo.shape[2])))
        xew = jnp.transpose(xe, (1, 0, 2)).reshape(cinp, n * lout)
        xow = jnp.transpose(xo, (1, 0, 2)).reshape(cinp, n * lout)
        kern1 = functools.partial(_pass1_s2_kernel, sc_conv)
        in_specs1 = [_lane_spec(cinp, bbw), _lane_spec(cinp, bbw),
                     _full_spec(w1k.shape), _full_spec((1, bbw))]
        args1 = [xew, xow, w1k, m_first]

    out_shapes1 = [jax.ShapeDtypeStruct((cout, n * lout), inter_dtype),
                   stat_shape, stat_shape]
    out_specs1 = [_lane_spec(cout, bbw), _stat_spec(cout), _stat_spec(cout)]
    if sc_conv:
        wsc = jnp.pad(params["shortcut"][:, :, 0].astype(jnp.float32),
                      ((0, 0), (0, cinp - cin))).astype(mxu_dtype)
        in_specs1.append(_full_spec(wsc.shape))
        args1.append(wsc)
        out_shapes1.append(jax.ShapeDtypeStruct((cout, n * lout), jnp.float32))
        out_specs1.append(_lane_spec(cout, bbw))

    flops1 = (2 * n * lout * 3 * cinp * cout
              + (2 * n * lout * cinp * cout if sc_conv else 0))
    bytes1 = (n * cinp * (l if stride == 1 else 2 * lout) * 4 + 3 * cout * cinp * wtm
              + act * itm + 2 * gsteps * cout * 4
              + ((act * 4 + cout * cinp * wtm) if sc_conv else 0))
    res1 = pl.pallas_call(
        kern1, grid=(gsteps,),
        in_specs=in_specs1, out_specs=tuple(out_specs1), out_shape=tuple(out_shapes1),
        compiler_params=cparams,
        cost_estimate=pl.CostEstimate(flops=int(flops1), transcendentals=0,
                                      bytes_accessed=int(bytes1)),
    )(*args1)
    if sc_conv:
        h1w, s1, q1, scw = res1
    else:
        h1w, s1, q1 = res1

    count = float(n * lout)
    scale1, bias1 = _fold_bn(s1, q1, params["bn1_gamma"], params["bn1_beta"], count)

    # --------- pass 2: folded BN1 + ReLU + conv2 + BN2 stats ---------
    flops2 = 2 * n * lout * 3 * cout * cout
    bytes2 = 2 * act * itm + 3 * cout * cout * wtm + 2 * gsteps * cout * 4 + 8 * cout
    h2w, s2, q2 = pl.pallas_call(
        _pass2_kernel, grid=(gsteps,),
        in_specs=[_lane_spec(cout, bbw), _full_spec(w2k.shape),
                  _full_spec((cout, 1)), _full_spec((cout, 1)),
                  _full_spec((1, bbw)), _full_spec((1, bbw))],
        out_specs=(_lane_spec(cout, bbw), _stat_spec(cout), _stat_spec(cout)),
        out_shape=(jax.ShapeDtypeStruct((cout, n * lout), inter_dtype),
                   stat_shape, stat_shape),
        compiler_params=cparams,
        cost_estimate=pl.CostEstimate(flops=int(flops2), transcendentals=0,
                                      bytes_accessed=int(bytes2)),
    )(h1w, w2k, scale1, bias1, m_first, m_last)

    scale2, bias2 = _fold_bn(s2, q2, params["bn2_gamma"], params["bn2_beta"], count)

    # --------- pass 3: folded BN2 + shortcut add + ReLU (pure elementwise) ---------
    in_specs3 = [_lane_spec(cout, bbw), _full_spec((cout, 1)), _full_spec((cout, 1))]
    args3 = [h2w, scale2, bias2]
    if shortcut:
        res = scw if sc_conv else xw                      # conv shortcut / identity (f32)
        in_specs3.append(_lane_spec(cout, bbw))
        args3.append(res)
    bytes3 = act * itm + act * 4 + (act * 4 if shortcut else 0)
    outw = pl.pallas_call(
        functools.partial(_pass3_kernel, shortcut), grid=(gsteps,),
        in_specs=in_specs3,
        out_specs=_lane_spec(cout, bbw),
        out_shape=jax.ShapeDtypeStruct((cout, n * lout), jnp.float32),
        compiler_params=cparams,
        cost_estimate=pl.CostEstimate(flops=int(4 * act), transcendentals=0,
                                      bytes_accessed=int(bytes3)),
    )(*args3)

    # Back to the PyTorch NCL layout (contiguity-preserving reshape + one transpose).
    return jnp.transpose(outw.reshape(cout, n, lout), (1, 0, 2))


conv_block_forward = jax.jit(_conv_block_forward,
                             static_argnames=("shortcut", "mxu_dtype"))


# ---------------------------------------------------------------------------
# Pure-JAX reference (f32, highest precision) for the correctness check
# ---------------------------------------------------------------------------
def conv_block_ref(x_ncl, params, *, shortcut):
    w1 = params["conv1"]
    w2 = params["conv2"]
    cout, cin, _ = w1.shape
    stride = 2 if cout > cin else 1

    def conv1d(x, w, s, p):
        return jax.lax.conv_general_dilated(
            x, w, (s,), [(p, p)], dimension_numbers=("NCH", "OIH", "NCH"),
            precision=jax.lax.Precision.HIGHEST)

    def bn(h, g, b):
        mean = jnp.mean(h, axis=(0, 2), keepdims=True)
        var = jnp.mean((h - mean) ** 2, axis=(0, 2), keepdims=True)
        return (h - mean) / jnp.sqrt(var + EPS) * g.reshape(1, -1, 1) + b.reshape(1, -1, 1)

    h = jax.nn.relu(bn(conv1d(x_ncl, w1, stride, 1),
                       params["bn1_gamma"], params["bn1_beta"]))
    h = bn(conv1d(h, w2, 1, 1), params["bn2_gamma"], params["bn2_beta"])
    if shortcut:
        h = h + (conv1d(x_ncl, params["shortcut"], stride, 0) if stride != 1 else x_ncl)
    return jax.nn.relu(h)


# ---------------------------------------------------------------------------
if __name__ == "__main__":
    def conv_init(k, shape):
        fan_in = shape[1] * shape[2]
        bound = 1.0 / float(fan_in) ** 0.5
        return jax.random.uniform(k, shape, jnp.float32, -bound, bound)

    def make_params(key, cin, cout):
        k1, k2, k3 = jax.random.split(key, 3)
        return {
            "conv1": conv_init(k1, (cout, cin, 3)),
            "conv2": conv_init(k2, (cout, cout, 3)),
            "shortcut": conv_init(k3, (cout, cin, 1)),
            "bn1_gamma": jnp.ones((cout,), jnp.float32),
            "bn1_beta": jnp.zeros((cout,), jnp.float32),
            "bn2_gamma": jnp.ones((cout,), jnp.float32),
            "bn2_beta": jnp.zeros((cout,), jnp.float32),
        }

    def check(x, p, shortcut, dtype, atol, rtol):
        out = jax.block_until_ready(
            conv_block_forward(x, p, shortcut=shortcut, mxu_dtype=dtype))
        ref = conv_block_ref(x, p, shortcut=shortcut)
        assert out.shape == ref.shape, (out.shape, ref.shape)
        err = float(jnp.max(jnp.abs(out - ref)))
        assert bool(jnp.allclose(out, ref, atol=atol, rtol=rtol)), (str(dtype), err)

    key = jax.random.PRNGKey(0)
    kp1, kp2, kx1, kx2 = jax.random.split(key, 4)

    N, L, CIN, COUT = 2, 4, 16, 8  # placeholder (reassigned below for clarity)
    N, L, CIN, COUT = 2, 16, 4, 8
    params_a = make_params(kp1, CIN, COUT)                # out>in -> stride 2, conv shortcut
    xa = jax.random.normal(kx1, (N, CIN, L), jnp.float32)
    params_b = make_params(kp2, 8, 8)                     # in==out -> stride 1, identity
    xb = jax.random.normal(kx2, (N, 8, L), jnp.float32)

    # Default fast path: bf16 MXU operands + bf16 inter-pass activations.  Tolerance
    # reflects bf16 rounding through two convs + BN normalization (perf review note).
    TOL = dict(atol=5e-2, rtol=5e-2)
    check(xa, params_a, True, jnp.bfloat16, **TOL)        # stride 2 + 1x1 conv shortcut
    check(xb, params_b, True, jnp.bfloat16, **TOL)        # stride 1 + identity shortcut
    check(xa, params_a, False, jnp.bfloat16, **TOL)       # no shortcut
    # Full-precision path through the same kernels.
    check(xa, params_a, True, jnp.float32, **TOL)

    print("KERNEL_OK")
</pallas_src>

<mosaic_0001>
module attributes {stable_mosaic.version = 11 : i64} {
  func.func @_pass3_kernel(%arg0: i32, %arg1: memref<8x16xbf16, #tpu.memory_space<vmem>>, %arg2: memref<8x1xf32, #tpu.memory_space<vmem>>, %arg3: memref<8x1xf32, #tpu.memory_space<vmem>>, %arg4: memref<8x16xf32, #tpu.memory_space<vmem>>, %arg5: memref<8x16xf32, #tpu.memory_space<vmem>>) attributes {dimension_semantics = [#tpu.dimension_semantics<parallel>], iteration_bounds = array<i64: 1>, scalar_prefetch = 0 : i64, scratch_operands = 0 : i64, tpu.core_type = #tpu.core_type<tc>, window_params = [{transform_indices = @transform_0, window_bounds = array<i64: 8, 16>}, {pipeline_mode = #tpu.pipeline_mode<synchronous>, transform_indices = @transform_1, window_bounds = array<i64: 8, 1>}, {pipeline_mode = #tpu.pipeline_mode<synchronous>, transform_indices = @transform_2, window_bounds = array<i64: 8, 1>}, {transform_indices = @transform_3, window_bounds = array<i64: 8, 16>}, {transform_indices = @transform_4, window_bounds = array<i64: 8, 16>}]} {
    %c0 = arith.constant 0 : index
    %c0_0 = arith.constant 0 : index
    %0 = vector.load %arg1[%c0, %c0_0] : memref<8x16xbf16, #tpu.memory_space<vmem>>, vector<8x16xbf16>
    %1 = arith.extf %0 : vector<8x16xbf16> to vector<8x16xf32>
    %c0_1 = arith.constant 0 : index
    %c0_2 = arith.constant 0 : index
    %2 = vector.load %arg2[%c0_1, %c0_2] : memref<8x1xf32, #tpu.memory_space<vmem>>, vector<8x1xf32>
    %3 = vector.broadcast %2 : vector<8x1xf32> to vector<8x16xf32>
    %4 = arith.mulf %1, %3 : vector<8x16xf32>
    %c0_3 = arith.constant 0 : index
    %c0_4 = arith.constant 0 : index
    %5 = vector.load %arg3[%c0_3, %c0_4] : memref<8x1xf32, #tpu.memory_space<vmem>>, vector<8x1xf32>
    %6 = vector.broadcast %5 : vector<8x1xf32> to vector<8x16xf32>
    %7 = arith.addf %4, %6 : vector<8x16xf32>
    %c0_5 = arith.constant 0 : index
    %c0_6 = arith.constant 0 : index
    %8 = vector.load %arg4[%c0_5, %c0_6] : memref<8x16xf32, #tpu.memory_space<vmem>>, vector<8x16xf32>
    %9 = arith.addf %7, %8 : vector<8x16xf32>
    %cst = arith.constant 0.000000e+00 : f32
    %10 = vector.broadcast %cst : f32 to vector<8x16xf32>
    %11 = arith.maximumf %9, %10 : vector<8x16xf32>
    %c0_7 = arith.constant 0 : index
    %c0_8 = arith.constant 0 : index
    %12 = vector.load %arg5[%c0_7, %c0_8] : memref<8x16xf32, #tpu.memory_space<vmem>>, vector<8x16xf32>
    tpu.vector_store %arg5[%c0_7, %c0_8], %11 {strides = array<i32>} : memref<8x16xf32, #tpu.memory_space<vmem>>, vector<8x16xf32>,
    return
  }
  func.func @transform_0(%arg0: i32) -> (i32, i32) {
    %c0_i32 = arith.constant 0 : i32
    %c0_i32_0 = arith.constant 0 : i32
    return %c0_i32, %arg0 : i32, i32
  }
  func.func @transform_1(%arg0: i32) -> (i32, i32) {
    %c0_i32 = arith.constant 0 : i32
    %c0_i32_0 = arith.constant 0 : i32
    %c0_i32_1 = arith.constant 0 : i32
    return %c0_i32, %c0_i32_0 : i32, i32
  }
  func.func @transform_2(%arg0: i32) -> (i32, i32) {
    %c0_i32 = arith.constant 0 : i32
    %c0_i32_0 = arith.constant 0 : i32
    %c0_i32_1 = arith.constant 0 : i32
    return %c0_i32, %c0_i32_0 : i32, i32
  }
  func.func @transform_3(%arg0: i32) -> (i32, i32) {
    %c0_i32 = arith.constant 0 : i32
    %c0_i32_0 = arith.constant 0 : i32
    return %c0_i32, %arg0 : i32, i32
  }
  func.func @transform_4(%arg0: i32) -> (i32, i32) {
    %c0_i32 = arith.constant 0 : i32
    %c0_i32_0 = arith.constant 0 : i32
    return %c0_i32, %arg0 : i32, i32
  }
}

module attributes {stable_mosaic.version = 11 : i64} {
  func.func @_pass2_kernel(%arg0: i32, %arg1: memref<8x16xbf16, #tpu.memory_space<vmem>>, %arg2: memref<3x8x8xbf16, #tpu.memory_space<vmem>>, %arg3: memref<8x1xf32, #tpu.memory_space<vmem>>, %arg4: memref<8x1xf32, #tpu.memory_space<vmem>>, %arg5: memref<1x16xf32, #tpu.memory_space<vmem>>, %arg6: memref<1x16xf32, #tpu.memory_space<vmem>>, %arg7: memref<8x16xbf16, #tpu.memory_space<vmem>>, %arg8: memref<1x8x1xf32, #tpu.memory_space<vmem>>, %arg9: memref<1x8x1xf32, #tpu.memory_space<vmem>>) attributes {dimension_semantics = [#tpu.dimension_semantics<parallel>], iteration_bounds = array<i64: 1>, scalar_prefetch = 0 : i64, scratch_operands = 0 : i64, tpu.core_type = #tpu.core_type<tc>, window_params = [{transform_indices = @transform_0, window_bounds = array<i64: 8, 16>}, {pipeline_mode = #tpu.pipeline_mode<synchronous>, transform_indices = @transform_1, window_bounds = array<i64: 3, 8, 8>}, {pipeline_mode = #tpu.pipeline_mode<synchronous>, transform_indices = @transform_2, window_bounds = array<i64: 8, 1>}, {pipeline_mode = #tpu.pipeline_mode<synchronous>, transform_indices = @transform_3, window_bounds = array<i64: 8, 1>}, {pipeline_mode = #tpu.pipeline_mode<synchronous>, transform_indices = @transform_4, window_bounds = array<i64: 1, 16>}, {pipeline_mode = #tpu.pipeline_mode<synchronous>, transform_indices = @transform_5, window_bounds = array<i64: 1, 16>}, {transform_indices = @transform_6, window_bounds = array<i64: 8, 16>}, {transform_indices = @transform_7, window_bounds = array<i64: 1, 8, 1>}, {transform_indices = @transform_8, window_bounds = array<i64: 1, 8, 1>}]} {
    %c0 = arith.constant 0 : index
    %c0_0 = arith.constant 0 : index
    %0 = vector.load %arg1[%c0, %c0_0] : memref<8x16xbf16, #tpu.memory_space<vmem>>, vector<8x16xbf16>
    %1 = arith.extf %0 : vector<8x16xbf16> to vector<8x16xf32>
    %c0_1 = arith.constant 0 : index
    %c0_2 = arith.constant 0 : index
    %2 = vector.load %arg3[%c0_1, %c0_2] : memref<8x1xf32, #tpu.memory_space<vmem>>, vector<8x1xf32>
    %3 = vector.broadcast %2 : vector<8x1xf32> to vector<8x16xf32>
    %4 = arith.mulf %1, %3 : vector<8x16xf32>
    %c0_3 = arith.constant 0 : index
    %c0_4 = arith.constant 0 : index
    %5 = vector.load %arg4[%c0_3, %c0_4] : memref<8x1xf32, #tpu.memory_space<vmem>>, vector<8x1xf32>
    %6 = vector.broadcast %5 : vector<8x1xf32> to vector<8x16xf32>
    %7 = arith.addf %4, %6 : vector<8x16xf32>
    %cst = arith.constant 0.000000e+00 : f32
    %8 = vector.broadcast %cst : f32 to vector<8x16xf32>
    %9 = arith.maximumf %7, %8 : vector<8x16xf32>
    %c0_5 = arith.constant 0 : index
    %c0_6 = arith.constant 0 : index
    %10 = vector.load %arg5[%c0_5, %c0_6] : memref<1x16xf32, #tpu.memory_space<vmem>>, vector<1x16xf32>
    %c0_7 = arith.constant 0 : index
    %c0_8 = arith.constant 0 : index
    %11 = vector.load %arg6[%c0_7, %c0_8] : memref<1x16xf32, #tpu.memory_space<vmem>>, vector<1x16xf32>
    %12 = vector.extract_strided_slice %9 {offsets = [0, 15], sizes = [8, 1], strides = [1, 1]} : vector<8x16xf32> to vector<8x1xf32>
    %13 = vector.extract_strided_slice %9 {offsets = [0, 0], sizes = [8, 15], strides = [1, 1]} : vector<8x16xf32> to vector<8x15xf32>
    %14 = tpu.concatenate %12, %13 in 1 : vector<8x1xf32>, vector<8x15xf32> -> vector<8x16xf32>
    %15 = vector.broadcast %10 : vector<1x16xf32> to vector<8x16xf32>
    %16 = arith.mulf %14, %15 : vector<8x16xf32>
    %17 = vector.extract_strided_slice %9 {offsets = [0, 1], sizes = [8, 15], strides = [1, 1]} : vector<8x16xf32> to vector<8x15xf32>
    %18 = vector.extract_strided_slice %9 {offsets = [0, 0], sizes = [8, 1], strides = [1, 1]} : vector<8x16xf32> to vector<8x1xf32>
    %19 = tpu.concatenate %17, %18 in 1 : vector<8x15xf32>, vector<8x1xf32> -> vector<8x16xf32>
    %20 = vector.broadcast %11 : vector<1x16xf32> to vector<8x16xf32>
    %21 = arith.mulf %19, %20 : vector<8x16xf32>
    %c0_9 = arith.constant 0 : index
    %c0_10 = arith.constant 0 : index
    %c0_11 = arith.constant 0 : index
    %22 = vector.load %arg2[%c0_9, %c0_10, %c0_11] : memref<3x8x8xbf16, #tpu.memory_space<vmem>>, vector<1x8x8xbf16>
    %23 = vector.shape_cast %22 : vector<1x8x8xbf16> to vector<8x8xbf16>
    %24 = arith.truncf %16 : vector<8x16xf32> to vector<8x16xbf16>
    %cst_12 = arith.constant dense<0.000000e+00> : vector<8x16xf32>
    %25 = tpu.matmul %23, %24, %cst_12 {dimension_numbers = #tpu.dot_dimension_numbers<[1], [0], [0], [1], [0, 0, 1, 1], [], []>} : vector<8x8xbf16>, vector<8x16xbf16>, vector<8x16xf32> -> vector<8x16xf32>
    %c1 = arith.constant 1 : index
    %c0_13 = arith.constant 0 : index
    %c0_14 = arith.constant 0 : index
    %26 = vector.load %arg2[%c1, %c0_13, %c0_14] : memref<3x8x8xbf16, #tpu.memory_space<vmem>>, vector<1x8x8xbf16>
    %27 = vector.shape_cast %26 : vector<1x8x8xbf16> to vector<8x8xbf16>
    %28 = arith.truncf %9 : vector<8x16xf32> to vector<8x16xbf16>
    %cst_15 = arith.constant dense<0.000000e+00> : vector<8x16xf32>
    %29 = tpu.matmul %27, %28, %cst_15 {dimension_numbers = #tpu.dot_dimension_numbers<[1], [0], [0], [1], [0, 0, 1, 1], [], []>} : vector<8x8xbf16>, vector<8x16xbf16>, vector<8x16xf32> -> vector<8x16xf32>
    %30 = arith.addf %25, %29 : vector<8x16xf32>
    %c2 = arith.constant 2 : index
    %c0_16 = arith.constant 0 : index
    %c0_17 = arith.constant 0 : index
    %31 = vector.load %arg2[%c2, %c0_16, %c0_17] : memref<3x8x8xbf16, #tpu.memory_space<vmem>>, vector<1x8x8xbf16>
    %32 = vector.shape_cast %31 : vector<1x8x8xbf16> to vector<8x8xbf16>
    %33 = arith.truncf %21 : vector<8x16xf32> to vector<8x16xbf16>
    %cst_18 = arith.constant dense<0.000000e+00> : vector<8x16xf32>
    %34 = tpu.matmul %32, %33, %cst_18 {dimension_numbers = #tpu.dot_dimension_numbers<[1], [0], [0], [1], [0, 0, 1, 1], [], []>} : vector<8x8xbf16>, vector<8x16xbf16>, vector<8x16xf32> -> vector<8x16xf32>
    %35 = arith.addf %30, %34 : vector<8x16xf32>
    %36 = arith.truncf %35 : vector<8x16xf32> to vector<8x16xbf16>
    %c0_19 = arith.constant 0 : index
    %c0_20 = arith.constant 0 : index
    %37 = vector.load %arg7[%c0_19, %c0_20] : memref<8x16xbf16, #tpu.memory_space<vmem>>, vector<8x16xbf16>
    tpu.vector_store %arg7[%c0_19, %c0_20], %36 {strides = array<i32>} : memref<8x16xbf16, #tpu.memory_space<vmem>>, vector<8x16xbf16>,
    %cst_21 = arith.constant dense<0.000000e+00> : vector<8xf32>
    %38 = vector.multi_reduction <add>, %35, %cst_21 [1] : vector<8x16xf32> to vector<8xf32>
    %39 = vector.shape_cast %38 : vector<8xf32> to vector<8x1xf32>
    %c0_22 = arith.constant 0 : index
    %c0_23 = arith.constant 0 : index
    %c0_24 = arith.constant 0 : index
    %40 = vector.load %arg8[%c0_22, %c0_23, %c0_24] : memref<1x8x1xf32, #tpu.memory_space<vmem>>, vector<1x8x1xf32>
    %41 = vector.shape_cast %40 : vector<1x8x1xf32> to vector<8x1xf32>
    %42 = vector.shape_cast %39 : vector<8x1xf32> to vector<1x8x1xf32>
    tpu.vector_store %arg8[%c0_22, %c0_23, %c0_24], %42 {strides = array<i32>} : memref<1x8x1xf32, #tpu.memory_space<vmem>>, vector<1x8x1xf32>,
    %43 = arith.mulf %35, %35 : vector<8x16xf32>
    %cst_25 = arith.constant dense<0.000000e+00> : vector<8xf32>
    %44 = vector.multi_reduction <add>, %43, %cst_25 [1] : vector<8x16xf32> to vector<8xf32>
    %45 = vector.shape_cast %44 : vector<8xf32> to vector<8x1xf32>
    %c0_26 = arith.constant 0 : index
    %c0_27 = arith.constant 0 : index
    %c0_28 = arith.constant 0 : index
    %46 = vector.load %arg9[%c0_26, %c0_27, %c0_28] : memref<1x8x1xf32, #tpu.memory_space<vmem>>, vector<1x8x1xf32>
    %47 = vector.shape_cast %46 : vector<1x8x1xf32> to vector<8x1xf32>
    %48 = vector.shape_cast %45 : vector<8x1xf32> to vector<1x8x1xf32>
    tpu.vector_store %arg9[%c0_26, %c0_27, %c0_28], %48 {strides = array<i32>} : memref<1x8x1xf32, #tpu.memory_space<vmem>>, vector<1x8x1xf32>,
    return
  }
  func.func @transform_0(%arg0: i32) -> (i32, i32) {
    %c0_i32 = arith.constant 0 : i32
    %c0_i32_0 = arith.constant 0 : i32
    return %c0_i32, %arg0 : i32, i32
  }
  func.func @transform_1(%arg0: i32) -> (i32, i32, i32) {
    %c0_i32 = arith.constant 0 : i32
    %c0_i32_0 = arith.constant 0 : i32
    %c0_i32_1 = arith.constant 0 : i32
    %c0_i32_2 = arith.constant 0 : i32
    return %c0_i32, %c0_i32_0, %c0_i32_1 : i32, i32, i32
  }
  func.func @transform_2(%arg0: i32) -> (i32, i32) {
    %c0_i32 = arith.constant 0 : i32
    %c0_i32_0 = arith.constant 0 : i32
    %c0_i32_1 = arith.constant 0 : i32
    return %c0_i32, %c0_i32_0 : i32, i32
  }
  func.func @transform_3(%arg0: i32) -> (i32, i32) {
    %c0_i32 = arith.constant 0 : i32
    %c0_i32_0 = arith.constant 0 : i32
    %c0_i32_1 = arith.constant 0 : i32
    return %c0_i32, %c0_i32_0 : i32, i32
  }
  func.func @transform_4(%arg0: i32) -> (i32, i32) {
    %c0_i32 = arith.constant 0 : i32
    %c0_i32_0 = arith.constant 0 : i32
    %c0_i32_1 = arith.constant 0 : i32
    return %c0_i32, %c0_i32_0 : i32, i32
  }
  func.func @transform_5(%arg0: i32) -> (i32, i32) {
    %c0_i32 = arith.constant 0 : i32
    %c0_i32_0 = arith.constant 0 : i32
    %c0_i32_1 = arith.constant 0 : i32
    return %c0_i32, %c0_i32_0 : i32, i32
  }
  func.func @transform_6(%arg0: i32) -> (i32, i32) {
    %c0_i32 = arith.constant 0 : i32
    %c0_i32_0 = arith.constant 0 : i32
    return %c0_i32, %arg0 : i32, i32
  }
  func.func @transform_7(%arg0: i32) -> (i32, i32, i32) {
    %c0_i32 = arith.constant 0 : i32
    %c0_i32_0 = arith.constant 0 : i32
    %c0_i32_1 = arith.constant 0 : i32
    return %arg0, %c0_i32, %c0_i32_0 : i32, i32, i32
  }
  func.func @transform_8(%arg0: i32) -> (i32, i32, i32) {
    %c0_i32 = arith.constant 0 : i32
    %c0_i32_0 = arith.constant 0 : i32
    %c0_i32_1 = arith.constant 0 : i32
    return %arg0, %c0_i32, %c0_i32_0 : i32, i32, i32
  }
}

module attributes {stable_mosaic.version = 11 : i64} {
  func.func @_pass1_s2_kernel(%arg0: i32, %arg1: memref<8x16xf32, #tpu.memory_space<vmem>>, %arg2: memref<8x16xf32, #tpu.memory_space<vmem>>, %arg3: memref<3x8x8xbf16, #tpu.memory_space<vmem>>, %arg4: memref<1x16xf32, #tpu.memory_space<vmem>>, %arg5: memref<8x8xbf16, #tpu.memory_space<vmem>>, %arg6: memref<8x16xbf16, #tpu.memory_space<vmem>>, %arg7: memref<1x8x1xf32, #tpu.memory_space<vmem>>, %arg8: memref<1x8x1xf32, #tpu.memory_space<vmem>>, %arg9: memref<8x16xf32, #tpu.memory_space<vmem>>) attributes {dimension_semantics = [#tpu.dimension_semantics<parallel>], iteration_bounds = array<i64: 1>, scalar_prefetch = 0 : i64, scratch_operands = 0 : i64, tpu.core_type = #tpu.core_type<tc>, window_params = [{transform_indices = @transform_0, window_bounds = array<i64: 8, 16>}, {transform_indices = @transform_1, window_bounds = array<i64: 8, 16>}, {pipeline_mode = #tpu.pipeline_mode<synchronous>, transform_indices = @transform_2, window_bounds = array<i64: 3, 8, 8>}, {pipeline_mode = #tpu.pipeline_mode<synchronous>, transform_indices = @transform_3, window_bounds = array<i64: 1, 16>}, {pipeline_mode = #tpu.pipeline_mode<synchronous>, transform_indices = @transform_4, window_bounds = array<i64: 8, 8>}, {transform_indices = @transform_5, window_bounds = array<i64: 8, 16>}, {transform_indices = @transform_6, window_bounds = array<i64: 1, 8, 1>}, {transform_indices = @transform_7, window_bounds = array<i64: 1, 8, 1>}, {transform_indices = @transform_8, window_bounds = array<i64: 8, 16>}]} {
    %c0 = arith.constant 0 : index
    %c0_0 = arith.constant 0 : index
    %0 = vector.load %arg1[%c0, %c0_0] : memref<8x16xf32, #tpu.memory_space<vmem>>, vector<8x16xf32>
    %c0_1 = arith.constant 0 : index
    %c0_2 = arith.constant 0 : index
    %1 = vector.load %arg2[%c0_1, %c0_2] : memref<8x16xf32, #tpu.memory_space<vmem>>, vector<8x16xf32>
    %2 = vector.extract_strided_slice %1 {offsets = [0, 15], sizes = [8, 1], strides = [1, 1]} : vector<8x16xf32> to vector<8x1xf32>
    %3 = vector.extract_strided_slice %1 {offsets = [0, 0], sizes = [8, 15], strides = [1, 1]} : vector<8x16xf32> to vector<8x15xf32>
    %4 = tpu.concatenate %2, %3 in 1 : vector<8x1xf32>, vector<8x15xf32> -> vector<8x16xf32>
    %c0_3 = arith.constant 0 : index
    %c0_4 = arith.constant 0 : index
    %5 = vector.load %arg4[%c0_3, %c0_4] : memref<1x16xf32, #tpu.memory_space<vmem>>, vector<1x16xf32>
    %6 = vector.broadcast %5 : vector<1x16xf32> to vector<8x16xf32>
    %7 = arith.mulf %4, %6 : vector<8x16xf32>
    %c0_5 = arith.constant 0 : index
    %c0_6 = arith.constant 0 : index
    %c0_7 = arith.constant 0 : index
    %8 = vector.load %arg3[%c0_5, %c0_6, %c0_7] : memref<3x8x8xbf16, #tpu.memory_space<vmem>>, vector<1x8x8xbf16>
    %9 = vector.shape_cast %8 : vector<1x8x8xbf16> to vector<8x8xbf16>
    %10 = arith.truncf %7 : vector<8x16xf32> to vector<8x16xbf16>
    %cst = arith.constant dense<0.000000e+00> : vector<8x16xf32>
    %11 = tpu.matmul %9, %10, %cst {dimension_numbers = #tpu.dot_dimension_numbers<[1], [0], [0], [1], [0, 0, 1, 1], [], []>} : vector<8x8xbf16>, vector<8x16xbf16>, vector<8x16xf32> -> vector<8x16xf32>
    %c1 = arith.constant 1 : index
    %c0_8 = arith.constant 0 : index
    %c0_9 = arith.constant 0 : index
    %12 = vector.load %arg3[%c1, %c0_8, %c0_9] : memref<3x8x8xbf16, #tpu.memory_space<vmem>>, vector<1x8x8xbf16>
    %13 = vector.shape_cast %12 : vector<1x8x8xbf16> to vector<8x8xbf16>
    %14 = arith.truncf %0 : vector<8x16xf32> to vector<8x16xbf16>
    %cst_10 = arith.constant dense<0.000000e+00> : vector<8x16xf32>
    %15 = tpu.matmul %13, %14, %cst_10 {dimension_numbers = #tpu.dot_dimension_numbers<[1], [0], [0], [1], [0, 0, 1, 1], [], []>} : vector<8x8xbf16>, vector<8x16xbf16>, vector<8x16xf32> -> vector<8x16xf32>
    %16 = arith.addf %11, %15 : vector<8x16xf32>
    %c2 = arith.constant 2 : index
    %c0_11 = arith.constant 0 : index
    %c0_12 = arith.constant 0 : index
    %17 = vector.load %arg3[%c2, %c0_11, %c0_12] : memref<3x8x8xbf16, #tpu.memory_space<vmem>>, vector<1x8x8xbf16>
    %18 = vector.shape_cast %17 : vector<1x8x8xbf16> to vector<8x8xbf16>
    %19 = arith.truncf %1 : vector<8x16xf32> to vector<8x16xbf16>
    %cst_13 = arith.constant dense<0.000000e+00> : vector<8x16xf32>
    %20 = tpu.matmul %18, %19, %cst_13 {dimension_numbers = #tpu.dot_dimension_numbers<[1], [0], [0], [1], [0, 0, 1, 1], [], []>} : vector<8x8xbf16>, vector<8x16xbf16>, vector<8x16xf32> -> vector<8x16xf32>
    %21 = arith.addf %16, %20 : vector<8x16xf32>
    %22 = arith.truncf %21 : vector<8x16xf32> to vector<8x16xbf16>
    %c0_14 = arith.constant 0 : index
    %c0_15 = arith.constant 0 : index
    %23 = vector.load %arg6[%c0_14, %c0_15] : memref<8x16xbf16, #tpu.memory_space<vmem>>, vector<8x16xbf16>
    tpu.vector_store %arg6[%c0_14, %c0_15], %22 {strides = array<i32>} : memref<8x16xbf16, #tpu.memory_space<vmem>>, vector<8x16xbf16>,
    %cst_16 = arith.constant dense<0.000000e+00> : vector<8xf32>
    %24 = vector.multi_reduction <add>, %21, %cst_16 [1] : vector<8x16xf32> to vector<8xf32>
    %25 = vector.shape_cast %24 : vector<8xf32> to vector<8x1xf32>
    %c0_17 = arith.constant 0 : index
    %c0_18 = arith.constant 0 : index
    %c0_19 = arith.constant 0 : index
    %26 = vector.load %arg7[%c0_17, %c0_18, %c0_19] : memref<1x8x1xf32, #tpu.memory_space<vmem>>, vector<1x8x1xf32>
    %27 = vector.shape_cast %26 : vector<1x8x1xf32> to vector<8x1xf32>
    %28 = vector.shape_cast %25 : vector<8x1xf32> to vector<1x8x1xf32>
    tpu.vector_store %arg7[%c0_17, %c0_18, %c0_19], %28 {strides = array<i32>} : memref<1x8x1xf32, #tpu.memory_space<vmem>>, vector<1x8x1xf32>,
    %29 = arith.mulf %21, %21 : vector<8x16xf32>
    %cst_20 = arith.constant dense<0.000000e+00> : vector<8xf32>
    %30 = vector.multi_reduction <add>, %29, %cst_20 [1] : vector<8x16xf32> to vector<8xf32>
    %31 = vector.shape_cast %30 : vector<8xf32> to vector<8x1xf32>
    %c0_21 = arith.constant 0 : index
    %c0_22 = arith.constant 0 : index
    %c0_23 = arith.constant 0 : index
    %32 = vector.load %arg8[%c0_21, %c0_22, %c0_23] : memref<1x8x1xf32, #tpu.memory_space<vmem>>, vector<1x8x1xf32>
    %33 = vector.shape_cast %32 : vector<1x8x1xf32> to vector<8x1xf32>
    %34 = vector.shape_cast %31 : vector<8x1xf32> to vector<1x8x1xf32>
    tpu.vector_store %arg8[%c0_21, %c0_22, %c0_23], %34 {strides = array<i32>} : memref<1x8x1xf32, #tpu.memory_space<vmem>>, vector<1x8x1xf32>,
    %c0_24 = arith.constant 0 : index
    %c0_25 = arith.constant 0 : index
    %35 = vector.load %arg5[%c0_24, %c0_25] : memref<8x8xbf16, #tpu.memory_space<vmem>>, vector<8x8xbf16>
    %36 = arith.truncf %0 : vector<8x16xf32> to vector<8x16xbf16>
    %cst_26 = arith.constant dense<0.000000e+00> : vector<8x16xf32>
    %37 = tpu.matmul %35, %36, %cst_26 {dimension_numbers = #tpu.dot_dimension_numbers<[1], [0], [0], [1], [0, 0, 1, 1], [], []>} : vector<8x8xbf16>, vector<8x16xbf16>, vector<8x16xf32> -> vector<8x16xf32>
    %c0_27 = arith.constant 0 : index
    %c0_28 = arith.constant 0 : index
    %38 = vector.load %arg9[%c0_27, %c0_28] : memref<8x16xf32, #tpu.memory_space<vmem>>, vector<8x16xf32>
    tpu.vector_store %arg9[%c0_27, %c0_28], %37 {strides = array<i32>} : memref<8x16xf32, #tpu.memory_space<vmem>>, vector<8x16xf32>,
    return
  }
  func.func @transform_0(%arg0: i32) -> (i32, i32) {
    %c0_i32 = arith.constant 0 : i32
    %c0_i32_0 = arith.constant 0 : i32
    return %c0_i32, %arg0 : i32, i32
  }
  func.func @transform_1(%arg0: i32) -> (i32, i32) {
    %c0_i32 = arith.constant 0 : i32
    %c0_i32_0 = arith.constant 0 : i32
    return %c0_i32, %arg0 : i32, i32
  }
  func.func @transform_2(%arg0: i32) -> (i32, i32, i32) {
    %c0_i32 = arith.constant 0 : i32
    %c0_i32_0 = arith.constant 0 : i32
    %c0_i32_1 = arith.constant 0 : i32
    %c0_i32_2 = arith.constant 0 : i32
    return %c0_i32, %c0_i32_0, %c0_i32_1 : i32, i32, i32
  }
  func.func @transform_3(%arg0: i32) -> (i32, i32) {
    %c0_i32 = arith.constant 0 : i32
    %c0_i32_0 = arith.constant 0 : i32
    %c0_i32_1 = arith.constant 0 : i32
    return %c0_i32, %c0_i32_0 : i32, i32
  }
  func.func @transform_4(%arg0: i32) -> (i32, i32) {
    %c0_i32 = arith.constant 0 : i32
    %c0_i32_0 = arith.constant 0 : i32
    %c0_i32_1 = arith.constant 0 : i32
    return %c0_i32, %c0_i32_0 : i32, i32
  }
  func.func @transform_5(%arg0: i32) -> (i32, i32) {
    %c0_i32 = arith.constant 0 : i32
    %c0_i32_0 = arith.constant 0 : i32
    return %c0_i32, %arg0 : i32, i32
  }
  func.func @transform_6(%arg0: i32) -> (i32, i32, i32) {
    %c0_i32 = arith.constant 0 : i32
    %c0_i32_0 = arith.constant 0 : i32
    %c0_i32_1 = arith.constant 0 : i32
    return %arg0, %c0_i32, %c0_i32_0 : i32, i32, i32
  }
  func.func @transform_7(%arg0: i32) -> (i32, i32, i32) {
    %c0_i32 = arith.constant 0 : i32
    %c0_i32_0 = arith.constant 0 : i32
    %c0_i32_1 = arith.constant 0 : i32
    return %arg0, %c0_i32, %c0_i32_0 : i32, i32, i32
  }
  func.func @transform_8(%arg0: i32) -> (i32, i32) {
    %c0_i32 = arith.constant 0 : i32
    %c0_i32_0 = arith.constant 0 : i32
    return %c0_i32, %arg0 : i32, i32
  }
}

</mosaic_0001>

<bundles_post_ra>
// kernel: _conv_block_forward.5
= control target key start
LH: loop header
LB: loop body
LE: loop exit
PB: predicated region body
PF: predicated region fallthrough
CT: control target
= control target key end

     0   :  { %v44_v0 = vmov 0   ;;  %vm36_vm0 = vcmask 130048   ;;  %s85_s1 = inlined_call_operand.vmem [shape: f32[8,1], index: 1, kind: input, shape index: {}]   ;;  %s86_s2 = inlined_call_operand.vmem [shape: f32[8,1], index: 2, kind: input, shape index: {}]   ;;  %s87_s0 = inlined_call_operand.vmem [shape: bf16[8,16], index: 0, kind: input, shape index: {}]   ;;  %s88_s3 = inlined_call_operand.vmem [shape: f32[8,16], index: 3, kind: input, shape index: {}]   ;;  %s89_s4 = inlined_call_operand.vmem [shape: f32[8,16], index: 4, kind: output, shape index: {}]  }
   0x1   :  { %43 = vset.pattern.permute.xlu0 %v44_v0  ;;  %v19_v1 = vld [vmem:[%s85_s1] sm:$0xff] }
   0x2   :  { %22 = vperm.xlu0 %43, %v19_v1   ;;  %v26_v2 = vld [vmem:[%s86_s2] sm:$0xff] }
   0x3   :  { %v17_v3 = vld [vmem:[%s87_s0] sm:$0xf] }
   0x4   :  { %v18_v4 = vunpack.c.l.bf16 %v17_v3  ;;  %v33_v7 = vld [vmem:[%s88_s3] sm:$0xff] }
   0x6   :  { %29 = vperm.xlu0 %43, %v26_v2  }
  0x7d   :  { %v23_v5 = vpop.permute.xlu0 %22 }
  0x7e   :  { %v25_v6 = vmul.f32 %v23_v5, %v18_v4 }
  0x81   :  { %v30_v8 = vpop.permute.xlu0 %29 }
  0x82   :  { %v32_v9 = vadd.f32 %v30_v8, %v25_v6 }
  0x84   :  { %v34_v10 = vadd.f32 %v33_v7, %v32_v9 }
  0x86   :  { %v35_v11 = vmax.f32 %v34_v10, 0.0 }
  0x88   :  { %37 = vst.msk [vmem:[%s89_s4] sm:$0xff] %vm36_vm0, %v35_v11 }

// kernel: _conv_block_forward.4
= control target key start
LH: loop header
LB: loop body
LE: loop exit
PB: predicated region body
PF: predicated region fallthrough
CT: control target
= control target key end

     0   :  { %v290_v0 = vmov 0   ;;  %v291_v3 = vmov 0.0   ;;  %vm292_vm0 = vmmov 0   ;;  %vm86_vm1 = vcmask 1043456   ;;  %s295_s12 = smov 1   ;;  %s296_s13 = smov 15   ;;  %s387_s2 = inlined_call_operand.vmem [shape: f32[8,1], index: 2, kind: input, shape index: {}]   ;;  %s388_s3 = inlined_call_operand.vmem [shape: f32[8,1], index: 3, kind: input, shape index: {}]   ;;  %s389_s0 = inlined_call_operand.vmem [shape: bf16[8,16], index: 0, kind: input, shape index: {}]   ;;  %s390_s1 = inlined_call_operand.vmem [shape: bf16[3,8,8], index: 1, kind: input, shape index: {}]   ;;  %s391_s4 = inlined_call_operand.vmem [shape: f32[1,16], index: 4, kind: input, shape index: {}]   ;;  %s392_s5 = inlined_call_operand.vmem [shape: f32[1,16], index: 5, kind: input, shape index: {}]   ;;  %s393_s6 = inlined_call_operand.vmem [shape: bf16[8,16], index: 6, kind: output, shape index: {0}]   ;;  %s394_s7 = inlined_call_operand.vmem [shape: f32[1,8,1], index: 7, kind: output, shape index: {1}]   ;;  %s395_s8 = inlined_call_operand.vmem [shape: f32[1,8,1], index: 8, kind: output, shape index: {2}]  }
   0x1   :  { %289 = vset.pattern.permute.xlu0 %v290_v0  ;;  %v29_v1 = vld [vmem:[%s387_s2] sm:$0xff]  ;;  %264 = vmatprep.subr.bf16.mxu0 %v291_v3  ;;  %s293_s2 = smov 127   ;;  %vm82_vm2 = vcmask 64512   ;;  %vm53_vm3 = vcmask 7168   ;;  %vm68_vm4 = vcmask 121856   ;;  %vm229_vm5 = vcmask 130048  }
   0x2   :  { %32 = vperm.xlu0 %289, %v29_v1   ;;  %v36_v2 = vld [vmem:[%s388_s3] sm:$0xff]  ;;  %270 = vmatprep.subr.bf16.mxu1 %v291_v3  ;;  %s294_s3 = smov 113   ;;  %v256_v29 = vld [vmem:[%s390_s1 + $0x8] sm:$0xf]  ;;  %vm227_vm6 = vcmask 125952  }
   0x3   :  { %v27_v4 = vld [vmem:[%s389_s0] sm:$0xf]  ;;  %266 = vmatprep.mubr.msk.bf16.mxu0 %vm292_vm0, %v291_v3  ;;  %272 = vmatprep.mubr.msk.bf16.mxu1 %vm292_vm0, %v291_v3  ;;  %v253_v13 = vld [vmem:[%s390_s1 + $0x4] sm:$0xf] }
   0x4   :  { %v28_v5 = vunpack.c.l.bf16 %v27_v4  ;;  %v251_v15 = vld [vmem:[%s391_s4] ss:$0 sm:$0xff] }
   0x5   :  { %v252_v19 = vld [vmem:[%s392_s5] ss:$0 sm:$0xff] }
   0x6   :  { %39 = vperm.xlu0 %289, %v36_v2   ;;  %v77_v26 = vld [vmem:[%s390_s1] sm:$0xf] }
  0x7d   :  { %v33_v6 = vpop.permute.xlu0 %32 }
  0x7e   :  { %v35_v7 = vmul.f32 %v33_v6, %v28_v5 }
  0x81   :  { %v40_v8 = vpop.permute.xlu0 %39 }
  0x82   :  { %v42_v9 = vadd.f32 %v40_v8, %v35_v7 }
  0x84   :  { %v43_v10 = vmax.f32 %v42_v9, 0.0 }
  0x86   :  { %62 = vrot.lane.b32.xlu0 %v43_v10, %s293_s2  ;;  %47 = vrot.lane.b32.xlu1 %v43_v10, %s294_s3  ;;  %v81_v11 = vpack.c.bf16 %v43_v10, %v43_v10 }
  0x88   :  { %v88_v12 = vsel %vm86_vm1, %v81_v11, 0 }
  0x89   :  { %265 = vmatpush3.bf16.msra.mxu0 %v88_v12 }
  0x8a   :  { %50 = vrot.lane.b32.xlu1 %v43_v10, %s295_s12  ;;  %276 = vmatprep.subr.bf16.mxu0 %v291_v3 }
  0x8c   :  { %267 = vmatmul.mubr.msk.bf16.vlgmr.msra.gmra.mxu0 %vm82_vm2, %v253_v13 }
  0x8d   :  { %278 = vmatprep.mubr.msk.bf16.mxu0 %vm292_vm0, %v291_v3 }
  0x8e   :  { %65 = vrot.lane.b32.xlu1 %v43_v10, %s296_s13 }
  0xf8   :  { %v48_v14 = vpop.permute.xlu1 %47  ;;  %v63_v20 = vpop.permute.xlu0 %62 }
  0xfc   :  { %v51_v16 = vpop.permute.xlu1 %50 }
  0xfd   :  { %v54_v17 = vsel %vm53_vm3, %v48_v14, %v51_v16 }
  0xfe   :  { %v61_v18 = vmul.f32 %v251_v15, %v54_v17 }
 0x100   :  { %v66_v21 = vpop.permute.xlu1 %65  ;;  %v78_v22 = vpack.c.bf16 %v61_v18, %v61_v18 }
 0x101   :  { %v69_v23 = vsel %vm68_vm4, %v63_v20, %v66_v21 }
 0x102   :  { %v76_v24 = vmul.f32 %v252_v19, %v69_v23  ;;  %v134_v25 = vsel %vm86_vm1, %v78_v22, 0 }
 0x103   :  { %271 = vmatpush3.bf16.msra.mxu1 %v134_v25 }
 0x104   :  { %v178_v27 = vpack.c.bf16 %v76_v24, %v76_v24 }
 0x106   :  { %273 = vmatmul.mubr.msk.bf16.vlgmr.msra.gmra.mxu1 %vm82_vm2, %v77_v26  ;;  %v183_v28 = vsel %vm86_vm1, %v178_v27, 0 }
 0x107   :  { %277 = vmatpush3.bf16.msra.mxu0 %v183_v28 }
 0x10a   :  { %279 = vmatmul.mubr.msk.bf16.vlgmr.msra.gmra.mxu0 %vm82_vm2, %v256_v29 }
 0x14c   :  { %v124_v30 = vpop.f32.mrf.mxu0 }
 0x14e   :  { %v268_v31 = vpop.f32.mrf.mxu0 }
 0x150   :  { %v127_v32 = vpop.f32.mrf.mxu0 }
 0x152   :  { %v269_v33 = vpop.f32.mrf.mxu0 }
 0x1c6   :  { %v170_v34 = vpop.f32.mrf.mxu1 }
 0x1c7   :  { %v171_v36 = vadd.f32 %v170_v34, %v124_v30 }
 0x1c8   :  { %v274_v35 = vpop.f32.mrf.mxu1 }
 0x1ca   :  { %v219_v37 = vpop.f32.mrf.mxu0  ;;  %v173_v38 = vpop.f32.mrf.mxu1 }
 0x1cb   :  { %v225_v39 = vadd.f32 %v219_v37, %v171_v36 }
 0x1cc   :  { %v280_v40 = vpop.f32.mrf.mxu0  ;;  %v275_v41 = vpop.f32.mrf.mxu1 }
 0x1cd   :  { %v226_v42 = vpack.c.bf16 %v225_v39, %v225_v39  ;;  %v230_v43 = vsel %vm229_vm5, %v225_v39, 0.0  ;;  %v234_v44 = vmul.f32 %v225_v39, %v225_v39 }
 0x1ce   :  { %231 = vadd.xlane.f32.xlu0 %v230_v43  ;;  %v222_v45 = vpop.f32.mrf.mxu0 }
 0x1cf   :  { %228 = vst.msk [vmem:[%s393_s6] sm:$0xf] %vm227_vm6, %v226_v42  ;;  %v235_v46 = vsel %vm229_vm5, %v234_v44, 0.0 }
 0x1d0   :  { %236 = vadd.xlane.f32.xlu1 %v235_v46  ;;  %v281_v47 = vpop.f32.mrf.mxu0 }
 0x257   :  { %v232_v48 = vpop.xlane.xlu0 %231 }
 0x258   :  { %233 = vst.msk [vmem:[%s394_s7] sm:$0xff] %vm53_vm3, %v232_v48 }
 0x259   :  { %v237_v49 = vpop.xlane.xlu1 %236 }
 0x25a   :  { %238 = vst.msk [vmem:[%s395_s8] sm:$0xff] %vm53_vm3, %v237_v49 }

// kernel: _conv_block_forward.3
= control target key start
LH: loop header
LB: loop body
LE: loop exit
PB: predicated region body
PF: predicated region fallthrough
CT: control target
= control target key end

     0   :  { %v310_v1 = vmov 0.0   ;;  %vm53_vm0 = vcmask 1043456   ;;  %vm311_vm1 = vmmov 0   ;;  %s312_s9 = smov 113   ;;  %vm49_vm2 = vcmask 64512   ;;  %s406_s1 = inlined_call_operand.vmem [shape: f32[8,16], index: 1, kind: input, shape index: {}]   ;;  %s407_s0 = inlined_call_operand.vmem [shape: f32[8,16], index: 0, kind: input, shape index: {}]   ;;  %s408_s2 = inlined_call_operand.vmem [shape: bf16[3,8,8], index: 2, kind: input, shape index: {}]   ;;  %s409_s3 = inlined_call_operand.vmem [shape: f32[1,16], index: 3, kind: input, shape index: {}]   ;;  %s410_s4 = inlined_call_operand.vmem [shape: bf16[8,8], index: 4, kind: input, shape index: {}]   ;;  %s411_s5 = inlined_call_operand.vmem [shape: bf16[8,16], index: 5, kind: output, shape index: {0}]   ;;  %s412_s8 = inlined_call_operand.vmem [shape: f32[8,16], index: 8, kind: output, shape index: {3}]   ;;  %s413_s6 = inlined_call_operand.vmem [shape: f32[1,8,1], index: 6, kind: output, shape index: {1}]   ;;  %s414_s7 = inlined_call_operand.vmem [shape: f32[1,8,1], index: 7, kind: output, shape index: {2}]  }
   0x1   :  { %v26_v0 = vld [vmem:[%s406_s1] sm:$0xff]  ;;  %282 = vmatprep.subr.bf16.mxu0 %v310_v1  ;;  %284 = vmatprep.mubr.msk.bf16.mxu0 %vm311_vm1, %v310_v1  ;;  %v271_v8 = vld [vmem:[%s408_s2 + $0x8] sm:$0xf]  ;;  %vm34_vm3 = vcmask 7168   ;;  %vm196_vm4 = vcmask 130048   ;;  %vm194_vm5 = vcmask 125952  }
   0x2   :  { %v25_v2 = vld [vmem:[%s407_s0] sm:$0xff]  ;;  %28 = vrot.lane.b32.xlu0 %v26_v0, %s312_s9  ;;  %v145_v3 = vpack.c.bf16 %v26_v0, %v26_v0  ;;  %288 = vmatprep.subr.bf16.mxu1 %v310_v1  ;;  %s313_s0 = smov 1  }
   0x3   :  { %v48_v4 = vpack.c.bf16 %v25_v2, %v25_v2  ;;  %290 = vmatprep.mubr.msk.bf16.mxu1 %vm311_vm1, %v310_v1  ;;  %v268_v6 = vld [vmem:[%s408_s2 + $0x4] sm:$0xf]  ;;  %v267_v10 = vld [vmem:[%s409_s3] ss:$0 sm:$0xff] }
   0x4   :  { %v150_v7 = vsel %vm53_vm0, %v145_v3, 0  ;;  %v44_v16 = vld [vmem:[%s408_s2] sm:$0xf] }
   0x5   :  { %v55_v5 = vsel %vm53_vm0, %v48_v4, 0  ;;  %v206_v17 = vld [vmem:[%s410_s4] sm:$0xf] }
   0x6   :  { %283 = vmatpush3.bf16.msra.mxu0 %v55_v5  ;;  %31 = vrot.lane.b32.xlu0 %v26_v0, %s313_s0 }
   0x7   :  { %294 = vmatprep.subr.bf16.mxu0 %v310_v1 }
   0x9   :  { %285 = vmatmul.mubr.msk.bf16.vlgmr.msra.gmra.mxu0 %vm49_vm2, %v268_v6 }
   0xa   :  { %295 = vmatpush3.bf16.msra.mxu0 %v150_v7  ;;  %296 = vmatprep.mubr.msk.bf16.mxu0 %vm311_vm1, %v310_v1 }
  0x11   :  { %297 = vmatmul.mubr.msk.bf16.vlgmr.msra.gmra.mxu0 %vm49_vm2, %v271_v8 }
  0x74   :  { %v29_v9 = vpop.permute.xlu0 %28 }
  0x78   :  { %v32_v11 = vpop.permute.xlu0 %31 }
  0x79   :  { %v35_v12 = vsel %vm34_vm3, %v29_v9, %v32_v11 }
  0x7a   :  { %v43_v13 = vmul.f32 %v267_v10, %v35_v12 }
  0x7c   :  { %v45_v14 = vpack.c.bf16 %v43_v13, %v43_v13 }
  0x7e   :  { %v101_v15 = vsel %vm53_vm0, %v45_v14, 0 }
  0x7f   :  { %289 = vmatpush3.bf16.msra.mxu1 %v101_v15 }
  0x80   :  { %300 = vmatprep.subr.bf16.mxu1 %v310_v1 }
  0x82   :  { %291 = vmatmul.mubr.msk.bf16.vlgmr.msra.gmra.mxu1 %vm49_vm2, %v44_v16 }
  0x83   :  { %301 = vmatpush3.bf16.msra.mxu1 %v55_v5  ;;  %302 = vmatprep.mubr.msk.bf16.mxu1 %vm311_vm1, %v310_v1 }
  0x8a   :  { %303 = vmatmul.mubr.msk.bf16.vlgmr.msra.gmra.mxu1 %vm49_vm2, %v206_v17 }
  0xc9   :  { %v91_v18 = vpop.f32.mrf.mxu0 }
  0xcb   :  { %v286_v19 = vpop.f32.mrf.mxu0 }
  0xcd   :  { %v94_v20 = vpop.f32.mrf.mxu0 }
  0xcf   :  { %v287_v21 = vpop.f32.mrf.mxu0 }
  0xd1   :  { %v186_v22 = vpop.f32.mrf.mxu0 }
  0xd3   :  { %v298_v23 = vpop.f32.mrf.mxu0 }
  0xd5   :  { %v189_v24 = vpop.f32.mrf.mxu0 }
  0xd7   :  { %v299_v25 = vpop.f32.mrf.mxu0 }
 0x142   :  { %v137_v26 = vpop.f32.mrf.mxu1 }
 0x143   :  { %v138_v27 = vadd.f32 %v137_v26, %v91_v18 }
 0x144   :  { %v292_v28 = vpop.f32.mrf.mxu1 }
 0x145   :  { %v192_v29 = vadd.f32 %v186_v22, %v138_v27 }
 0x146   :  { %v140_v30 = vpop.f32.mrf.mxu1 }
 0x147   :  { %v193_v31 = vpack.c.bf16 %v192_v29, %v192_v29  ;;  %v197_v32 = vsel %vm196_vm4, %v192_v29, 0.0  ;;  %v201_v33 = vmul.f32 %v192_v29, %v192_v29 }
 0x148   :  { %v293_v34 = vpop.f32.mrf.mxu1  ;;  %198 = vadd.xlane.f32.xlu1 %v197_v32 }
 0x149   :  { %195 = vst.msk [vmem:[%s411_s5] sm:$0xf] %vm194_vm5, %v193_v31  ;;  %v202_v36 = vsel %vm196_vm4, %v201_v33, 0.0 }
 0x14a   :  { %v244_v35 = vpop.f32.mrf.mxu1 }
 0x14b   :  { %250 = vst.msk [vmem:[%s412_s8] sm:$0xff] %vm196_vm4, %v244_v35 }
 0x14c   :  { %203 = vadd.xlane.f32.xlu1 %v202_v36  ;;  %v304_v37 = vpop.f32.mrf.mxu1 }
 0x14e   :  { %v247_v38 = vpop.f32.mrf.mxu1 }
 0x150   :  { %v305_v39 = vpop.f32.mrf.mxu1 }
 0x1d1   :  { %v199_v40 = vpop.xlane.xlu1 %198 }
 0x1d2   :  { %200 = vst.msk [vmem:[%s413_s6] sm:$0xff] %vm34_vm3, %v199_v40 }
 0x1d5   :  { %v204_v41 = vpop.xlane.xlu1 %203 }
 0x1d6   :  { %205 = vst.msk [vmem:[%s414_s7] sm:$0xff] %vm34_vm3, %v204_v41 }

</bundles_post_ra>
